<compile_context>
chip_gen: v7x
topology: tpu7x:2x2x1
jax: 0.10.0
libtpu: 0.0.40
codegen_flags: <defaults>
</compile_context>

<pallas_src>
import functools

import jax
import jax.numpy as jnp
from jax.experimental import pallas as pl
from jax.experimental.pallas import tpu as pltpu


_LANE = 512            # lane-dense tile width (multiple of 128)
_MAX_BLOCK_ROWS = 512  # up to (512, 512) f32 = 1 MiB per block


def _dropout_kernel(x_ref, o_ref, *, threshold, scale, seed, cols):
    """Inverted dropout on one (TR, cols) tile.

    Mask bits come from hashing the global flat element index with the seed,
    so the mask does not depend on the block/grid decomposition.
    """
    i = pl.program_id(0)
    tr, c = x_ref.shape

    row = jax.lax.broadcasted_iota(jnp.int32, (tr, c), 0)
    col = jax.lax.broadcasted_iota(jnp.int32, (tr, c), 1)
    base = i * tr                                   # first global row of this block
    idx = ((base + row) * cols + col).astype(jnp.uint32)

    # lowbias32-style 32-bit mixer, seeded.
    h = idx ^ jnp.uint32(seed & 0xFFFFFFFF)
    h = h * jnp.uint32(0x9E3779B9)
    h = h ^ (h >> 16)
    h = h * jnp.uint32(0x7FEB352D)
    h = h ^ (h >> 15)
    h = h * jnp.uint32(0x846CA68B)
    h = h ^ (h >> 16)

    # Drop element iff h < threshold  (threshold ~= p * 2^32) => keep prob 1-p.
    keep = h >= jnp.uint32(threshold)

    x = x_ref[...]
    o_ref[...] = jnp.where(keep, x * jnp.asarray(scale, x.dtype), jnp.zeros_like(x))


def _round_up(n, m):
    return (n + m - 1) // m * m


def _dropout_nd(arr, p, seed):
    """Apply inverted dropout to an arbitrary-shape array via a Pallas kernel."""
    orig_shape = arr.shape
    n = arr.size
    if n == 0:
        return arr

    # Lane-dense 2-D layout: (rows_pad, _LANE), padded to whole blocks.
    rows = pl.cdiv(n, _LANE)
    tr = min(_MAX_BLOCK_ROWS, _round_up(rows, 8))   # block rows, multiple of 8
    rows_pad = _round_up(rows, tr)
    total = rows_pad * _LANE

    flat = arr.reshape(-1)
    if total != n:
        flat = jnp.pad(flat, (0, total - n))
    x2d = flat.reshape(rows_pad, _LANE)

    threshold = min(max(int(round(p * (2 ** 32))), 0), 2 ** 32 - 1)
    scale = 1.0 / (1.0 - p)

    kernel = functools.partial(
        _dropout_kernel,
        threshold=threshold,
        scale=scale,
        seed=int(seed),
        cols=_LANE,
    )

    out2d = pl.pallas_call(
        kernel,
        out_shape=jax.ShapeDtypeStruct((rows_pad, _LANE), arr.dtype),
        grid=(rows_pad // tr,),
        in_specs=[pl.BlockSpec((tr, _LANE), lambda i: (i, 0))],
        out_specs=pl.BlockSpec((tr, _LANE), lambda i: (i, 0)),
        compiler_params=pltpu.CompilerParams(
            dimension_semantics=("parallel",)),
    )(x2d)

    out = out2d.reshape(-1)
    if total != n:
        out = out[:n]
    return out.reshape(orig_shape)


def sequence_dropout(x, p=0.0, seed=0, training=True):
    """JAX/Pallas equivalent of deeplay SequenceDropout.forward.

    x may be a jnp.ndarray or a tuple (output, hidden).  Dropout is applied to
    the array (or to x[0]); the hidden state x[1] is returned unchanged.
    """

    def apply(arr):
        if (not training) or p == 0.0:
            return arr
        if p >= 1.0:
            return jnp.zeros_like(arr)
        return _dropout_nd(arr, p, seed)

    if isinstance(x, tuple):
        # TODO(synk): PackedSequence has no JAX equivalent; a packed sequence is
        # treated as its flat .data tensor, which the same elementwise kernel covers.
        return (apply(x[0]), x[1])
    return apply(x)


if __name__ == "__main__":
    key = jax.random.PRNGKey(0)
    k1, k2, k3 = jax.random.split(key, 3)

    L, N, H = 8, 2, 32  # seq_len, batch, hidden
    x = jax.random.normal(k1, (L, N, H), dtype=jnp.float32)
    h = jax.random.normal(k2, (1, N, H), dtype=jnp.float32)  # hidden state

    p = 0.5

    # Tuple case: dropout on output only, hidden passes through.
    out, h_out = sequence_dropout((x, h), p=p, seed=0, training=True)
    out = jax.block_until_ready(out)
    h_out = jax.block_until_ready(h_out)

    # Plain-tensor case.
    out2 = jax.block_until_ready(sequence_dropout(x, p=p, seed=1, training=True))

    # p = 0.0 (module default) -> identity; eval mode -> identity.
    out_id = jax.block_until_ready(sequence_dropout(x, p=0.0, training=True))
    out_eval = jax.block_until_ready(sequence_dropout(x, p=p, training=False))

    # Ragged shape (exercises the pad/slice path).
    y = jax.random.normal(k3, (5, 3, 17), dtype=jnp.float32)
    out_y = jax.block_until_ready(sequence_dropout(y, p=0.3, seed=7, training=True))

    assert out.shape == x.shape and out2.shape == x.shape and out_y.shape == y.shape
    assert bool(jnp.all(h_out == h))                      # hidden untouched
    assert bool(jnp.all(out_id == x))                     # p=0 identity
    assert bool(jnp.all(out_eval == x))                   # eval identity
    assert bool(jnp.all(jnp.isfinite(out)))

    # Surviving elements are exactly x / (1 - p).
    diff = jnp.where(out != 0.0, jnp.abs(out - x / (1.0 - p)), 0.0)
    assert float(jnp.max(diff)) < 1e-5
    diff_y = jnp.where(out_y != 0.0, jnp.abs(out_y - y / (1.0 - 0.3)), 0.0)
    assert float(jnp.max(diff_y)) < 1e-5

    # Roughly p of the elements dropped.
    frac_zero = float(jnp.mean((out == 0.0).astype(jnp.float32)))
    assert 0.25 < frac_zero < 0.75

    # Same seed -> same mask (reproducible).
    out_rep = jax.block_until_ready(sequence_dropout(x, p=p, seed=1, training=True))
    assert bool(jnp.all(out_rep == out2))

    print("KERNEL_OK")
</pallas_src>

<mosaic_0001>
module attributes {stable_mosaic.version = 11 : i64} {
  func.func @_dropout_kernel(%arg0: i32, %arg1: memref<8x512xf32, #tpu.memory_space<vmem>>, %arg2: memref<8x512xf32, #tpu.memory_space<vmem>>) attributes {dimension_semantics = [#tpu.dimension_semantics<parallel>], iteration_bounds = array<i64: 1>, scalar_prefetch = 0 : i64, scratch_operands = 0 : i64, tpu.core_type = #tpu.core_type<tc>, window_params = [{transform_indices = @transform_0, window_bounds = array<i64: 8, 512>}, {transform_indices = @transform_1, window_bounds = array<i64: 8, 512>}]} {
    %0 = tpu.iota {dimensions = array<i32: 0>} : vector<8x512xi32>
    %1 = tpu.iota {dimensions = array<i32: 1>} : vector<8x512xi32>
    %c8_i32 = arith.constant 8 : i32
    %2 = arith.muli %arg0, %c8_i32 : i32
    %3 = vector.broadcast %2 : i32 to vector<8x512xi32>
    %4 = arith.addi %3, %0 : vector<8x512xi32>
    %c512_i32 = arith.constant 512 : i32
    %5 = vector.broadcast %c512_i32 : i32 to vector<8x512xi32>
    %6 = arith.muli %4, %5 : vector<8x512xi32>
    %7 = arith.addi %6, %1 : vector<8x512xi32>
    %c0_i32 = arith.constant 0 : i32
    %8 = vector.broadcast %c0_i32 : i32 to vector<8x512xi32>
    %9 = arith.xori %7, %8 : vector<8x512xi32>
    %c-1640531527_i32 = arith.constant -1640531527 : i32
    %10 = vector.broadcast %c-1640531527_i32 : i32 to vector<8x512xi32>
    %11 = arith.muli %9, %10 : vector<8x512xi32>
    %c16_i32 = arith.constant 16 : i32
    %12 = vector.broadcast %c16_i32 : i32 to vector<8x512xi32>
    %13 = arith.shrui %11, %12 : vector<8x512xi32>
    %14 = arith.xori %11, %13 : vector<8x512xi32>
    %c2146121005_i32 = arith.constant 2146121005 : i32
    %15 = vector.broadcast %c2146121005_i32 : i32 to vector<8x512xi32>
    %16 = arith.muli %14, %15 : vector<8x512xi32>
    %c15_i32 = arith.constant 15 : i32
    %17 = vector.broadcast %c15_i32 : i32 to vector<8x512xi32>
    %18 = arith.shrui %16, %17 : vector<8x512xi32>
    %19 = arith.xori %16, %18 : vector<8x512xi32>
    %c-2073254261_i32 = arith.constant -2073254261 : i32
    %20 = vector.broadcast %c-2073254261_i32 : i32 to vector<8x512xi32>
    %21 = arith.muli %19, %20 : vector<8x512xi32>
    %c16_i32_0 = arith.constant 16 : i32
    %22 = vector.broadcast %c16_i32_0 : i32 to vector<8x512xi32>
    %23 = arith.shrui %21, %22 : vector<8x512xi32>
    %24 = arith.xori %21, %23 : vector<8x512xi32>
    %c-2147483648_i32 = arith.constant -2147483648 : i32
    %25 = vector.broadcast %c-2147483648_i32 : i32 to vector<8x512xi32>
    %26 = arith.cmpi uge, %24, %25 : vector<8x512xi32>
    %c0 = arith.constant 0 : index
    %c0_1 = arith.constant 0 : index
    %27 = vector.load %arg1[%c0, %c0_1] : memref<8x512xf32, #tpu.memory_space<vmem>>, vector<8x512xf32>
    %cst = arith.constant 2.000000e+00 : f32
    %28 = vector.broadcast %cst : f32 to vector<8x512xf32>
    %29 = arith.mulf %27, %28 : vector<8x512xf32>
    %cst_2 = arith.constant 0.000000e+00 : f32
    %30 = vector.broadcast %cst_2 : f32 to vector<8x512xf32>
    %31 = arith.select %26, %29, %30 : vector<8x512xi1>, vector<8x512xf32>
    %c0_3 = arith.constant 0 : index
    %c0_4 = arith.constant 0 : index
    %32 = vector.load %arg2[%c0_3, %c0_4] : memref<8x512xf32, #tpu.memory_space<vmem>>, vector<8x512xf32>
    tpu.vector_store %arg2[%c0_3, %c0_4], %31 {strides = array<i32>} : memref<8x512xf32, #tpu.memory_space<vmem>>, vector<8x512xf32>,
    return
  }
  func.func @transform_0(%arg0: i32) -> (i32, i32) {
    %c0_i32 = arith.constant 0 : i32
    %c0_i32_0 = arith.constant 0 : i32
    return %arg0, %c0_i32 : i32, i32
  }
  func.func @transform_1(%arg0: i32) -> (i32, i32) {
    %c0_i32 = arith.constant 0 : i32
    %c0_i32_0 = arith.constant 0 : i32
    return %arg0, %c0_i32 : i32, i32
  }
}

</mosaic_0001>

<bundles_post_ra>
// kernel: tpu_custom_call.1
= control target key start
LH: loop header
LB: loop body
LE: loop exit
PB: predicated region body
PF: predicated region fallthrough
CT: control target
= control target key end

     0   :  { %6 = vsyncpa [#allocation3], 0  ;;  %s193_s0 = inlined_call_operand.hbm [shape: f32[8,512], index: 0, kind: input, shape index: {}]   ;;  %s194_s1 = inlined_call_operand.hbm [shape: f32[8,512], index: 1, kind: output, shape index: {}]  }
   0x1   :  { %7 = vsyncpa [#allocation4], 0  ;;  %s157_s6 = smov [#allocation2]   ;;  %s109_s10 = scalar_lea.hbm %s193_s0, 512 }
   0x2   :  { %s14_s7 = sshll.u32 %s157_s6, 4  ;;  %p110_p0 = scmp.ne.s32.totalorder %s193_s0, %s109_s10  ;;  %s15_s7 = int_to_ptr.vmem [resolvable:$true] %s14_s7 }
   0x3   :  { %p113_p1 = scmp.lt.u32.totalorder %s109_s10, %s193_s0 }
   0x5   :  { %p115_p2 = pnand %p113_p1, %p110_p0 }
   0x7   :  { %118 = shalt.err (!%p115_p2)
}
   0x8   :  { %s119_s15 = scalar_lea.vmem %s15_s7, 512  ;;  %p124_p4 = scmp.lt.s32.totalorder %s15_s7, %s15_s7 }
   0x9   :  { %p120_p3 = scmp.ne.s32.totalorder %s15_s7, %s119_s15  ;;  %p125_p5 = scmp.lt.s32.totalorder %s119_s15, %s119_s15 }
   0xb   :  { %p126_p6 = por %p125_p5, %p124_p4 }
   0xd   :  { %p127_p7 = pnand %p126_p6, %p120_p3 }
   0xf   :  { %130 = shalt.err (!%p127_p7)
}
  0x10   :  { %17 = dma.hbm_to_vmem [thread:$0]  %s193_s0, 512, %s15_s7, [#allocation3]  }
  0x11   :  { %153 = dma.done.wait [#allocation3], 512  }
  0x12   :  { %154 = vsyncadd [#allocation3], 4294966784  ;;  %v21_v0 = vlaneseq  ;;  %v76_v36 = vld [vmem:[#allocation2] sm:$0xff]  ;;  %v77_v38 = vld [vmem:[#allocation2 + $0x8] sm:$0xff]  ;;  %s158_s0 = smov [#allocation5]  }
  0x13   :  { %v78_v40 = vld [vmem:[#allocation2 + $0x10] sm:$0xff]  ;;  %v79_v42 = vld [vmem:[#allocation2 + $0x18] sm:$0xff]  ;;  %v80_v45 = vmul.f32 2.0, %v76_v36  ;;  %v81_v46 = vmul.f32 2.0, %v77_v38  ;;  %s98_s18 = sshll.u32 %s158_s0, 4  ;;  %s99_s18 = int_to_ptr.vmem [resolvable:$true] %s98_s18 }
  0x14   :  { %v22_v1 = vshrl.u32 %v21_v0, 7  ;;  %v24_v2 = vand.u32 127, %v21_v0  ;;  %v82_v51 = vmul.f32 2.0, %v78_v40  ;;  %v83_v52 = vmul.f32 2.0, %v79_v42  ;;  %s131_s19 = scalar_lea.vmem %s99_s18, 512  ;;  %p136_p9 = scmp.lt.s32.totalorder %s99_s18, %s99_s18 }
  0x15   :  { %p132_p8 = scmp.ne.s32.totalorder %s99_s18, %s131_s19  ;;  %p137_p10 = scmp.lt.s32.totalorder %s131_s19, %s131_s19 }
  0x16   :  { %v31_v3 = vmul.u32 512, %v22_v1  ;;  %v25_v4 = vadd.s32 128, %v24_v2  ;;  %v26_v5 = vadd.s32 256, %v24_v2  ;;  %v27_v6 = vadd.s32 384, %v24_v2 }
  0x17   :  { %p138_p11 = por %p137_p10, %p136_p9 }
  0x18   :  { %v32_v7 = vadd.s32 %v31_v3, %v24_v2  ;;  %v33_v8 = vadd.s32 %v31_v3, %v25_v4  ;;  %v34_v9 = vadd.s32 %v31_v3, %v26_v5  ;;  %v35_v10 = vadd.s32 %v31_v3, %v27_v6 }
  0x19   :  { %p139_p12 = pnand %p138_p11, %p132_p8 }
  0x1a   :  { %v36_v11 = vmul.u32 2654435769, %v32_v7  ;;  %v37_v12 = vmul.u32 2654435769, %v33_v8 }
  0x1b   :  { %v38_v13 = vmul.u32 2654435769, %v34_v9  ;;  %v39_v14 = vmul.u32 2654435769, %v35_v10 }
  0x1c   :  { %v40_v15 = vshrl.u32 %v36_v11, 16  ;;  %v41_v16 = vshrl.u32 %v37_v12, 16 }
  0x1d   :  { %v42_v17 = vshrl.u32 %v38_v13, 16  ;;  %v43_v18 = vshrl.u32 %v39_v14, 16 }
  0x1e   :  { %v44_v19 = vxor.u32 %v40_v15, %v36_v11  ;;  %v45_v20 = vxor.u32 %v41_v16, %v37_v12 }
  0x1f   :  { %v46_v21 = vxor.u32 %v42_v17, %v38_v13  ;;  %v47_v22 = vxor.u32 %v43_v18, %v39_v14 }
  0x20   :  { %v48_v23 = vmul.u32 2146121005, %v44_v19  ;;  %v49_v24 = vmul.u32 2146121005, %v45_v20 }
  0x21   :  { %v50_v25 = vmul.u32 2146121005, %v46_v21  ;;  %v51_v26 = vmul.u32 2146121005, %v47_v22 }
  0x22   :  { %v52_v27 = vshrl.u32 %v48_v23, 15  ;;  %v53_v28 = vshrl.u32 %v49_v24, 15 }
  0x23   :  { %v54_v29 = vshrl.u32 %v50_v25, 15  ;;  %v55_v30 = vshrl.u32 %v51_v26, 15 }
  0x24   :  { %v56_v31 = vxor.u32 %v52_v27, %v48_v23  ;;  %v57_v32 = vxor.u32 %v53_v28, %v49_v24 }
  0x25   :  { %v58_v33 = vxor.u32 %v54_v29, %v50_v25  ;;  %v59_v34 = vxor.u32 %v55_v30, %v51_v26 }
  0x26   :  { %v60_v35 = vmul.u32 2221713035, %v56_v31  ;;  %v61_v37 = vmul.u32 2221713035, %v57_v32 }
  0x27   :  { %v62_v39 = vmul.u32 2221713035, %v58_v33  ;;  %v63_v41 = vmul.u32 2221713035, %v59_v34 }
  0x28   :  { %v64_v43 = vshrl.u32 %v60_v35, 16  ;;  %v65_v44 = vshrl.u32 %v61_v37, 16 }
  0x29   :  { %v66_v47 = vshrl.u32 %v62_v39, 16  ;;  %v67_v48 = vshrl.u32 %v63_v41, 16 }
  0x2a   :  { %v68_v49 = vxor.u32 %v64_v43, %v60_v35  ;;  %v69_v50 = vxor.u32 %v65_v44, %v61_v37 }
  0x2b   :  { %v70_v53 = vxor.u32 %v66_v47, %v62_v39  ;;  %v71_v54 = vxor.u32 %v67_v48, %v63_v41 }
  0x2c   :  { %vm72_vm0 = vcmp.ge.u32.totalorder %v68_v49, 2147483648  ;;  %vm73_vm1 = vcmp.ge.u32.totalorder %v69_v50, 2147483648 }
  0x2d   :  { %v84_v55 = vsel %vm72_vm0, %v80_v45, 0.0  ;;  %v85_v56 = vsel %vm73_vm1, %v81_v46, 0.0  ;;  %vm74_vm2 = vcmp.ge.u32.totalorder %v70_v53, 2147483648  ;;  %vm75_vm3 = vcmp.ge.u32.totalorder %v71_v54, 2147483648 }
  0x2e   :  { %88 = vst [vmem:[#allocation5] sm:$0xff] %v84_v55  ;;  %89 = vst [vmem:[#allocation5 + $0x8] sm:$0xff] %v85_v56  ;;  %v86_v57 = vsel %vm74_vm2, %v82_v51, 0.0  ;;  %v87_v58 = vsel %vm75_vm3, %v83_v52, 0.0 }
  0x2f   :  { %90 = vst [vmem:[#allocation5 + $0x10] sm:$0xff] %v86_v57  ;;  %91 = vst [vmem:[#allocation5 + $0x18] sm:$0xff] %v87_v58 }
  0x30   :  { %142 = shalt.err (!%p139_p12)
}
  0x31   :  { %s143_s22 = scalar_lea.hbm %s194_s1, 512 }
  0x32   :  { %p144_p13 = scmp.ne.s32.totalorder %s194_s1, %s143_s22  ;;  %p147_p0 = scmp.lt.u32.totalorder %s143_s22, %s194_s1 }
  0x34   :  { %p149_p1 = pnand %p147_p0, %p144_p13 }
  0x36   :  { %152 = shalt.err (!%p149_p1)
}
  0x37   :  { %101 = dma.vmem_to_hbm [thread:$0]  %s99_s18, 512, %s194_s1, [#allocation4]  }
  0x38   :  { %155 = dma.done.wait [#allocation4], 512  }
  0x39   :  { %156 = vsyncadd [#allocation4], 4294966784 }
  0x3a   :  { %105 = vsyncpa [#allocation3], 1 }
  0x3b   :  { %106 = vsyncpa [#allocation4], 1 }

</bundles_post_ra>
